<compile_context>
chip_gen: v5e
topology: v5e:2x2
jax: 0.10.0
libtpu: 0.0.40
codegen_flags: <defaults>
</compile_context>

<pallas_src>
import functools

import jax
import jax.numpy as jnp
from jax.experimental import pallas as pl
from jax.experimental.pallas import tpu as pltpu

_EPS = 1e-5
_SLOPE = 0.2  # LeakyReLU negative slope


def _round_up(a, b):
    return ((a + b - 1) // b) * b


def _stats_kernel(x_ref, w1_ref, b1_ref, w2_ref, s1_ref, s2_ref, *,
                  hw_valid, hw_tile):
    """Per pixel-tile: y2 = (lrelu(W1ᵀx + b1)) through W2ᵀ; emit per-tile sum/sumsq."""
    x = x_ref[0].astype(jnp.bfloat16)                               # (Cin, T)
    h = jnp.dot(w1_ref[...], x, preferred_element_type=jnp.float32) # (ndf, T) f32
    h = h + b1_ref[...]                                             # (ndf,1) bcast over lanes
    h = jnp.maximum(h, _SLOPE * h)                                  # LeakyReLU(0.2)
    y2 = jnp.dot(w2_ref[...], h.astype(jnp.bfloat16),
                 preferred_element_type=jnp.float32)                # (c2, T) f32
    # conv2 bias intentionally omitted: training-mode BatchNorm cancels it exactly.
    if hw_valid % hw_tile != 0:
        # Mask padded pixels (lanes) out of the batch statistics (static padding).
        cols = (pl.program_id(1) * hw_tile
                + jax.lax.broadcasted_iota(jnp.int32, y2.shape, 1))
        y2 = jnp.where(cols < hw_valid, y2, 0.0)
    s1_ref[...] = jnp.sum(y2, axis=1, keepdims=True)[None, None]        # (1,1,c2,1)
    s2_ref[...] = jnp.sum(y2 * y2, axis=1, keepdims=True)[None, None]   # (1,1,c2,1)


def _fused_kernel(x_ref, w1_ref, b1_ref, w2_ref, scale_ref, shift_ref,
                  w3_ref, b3_ref, o_ref):
    """Per pixel-tile: recompute conv1+lrelu+conv2, folded BN, lrelu, 1x1 conv->1ch."""
    x = x_ref[0].astype(jnp.bfloat16)                               # (Cin, T)
    h = jnp.dot(w1_ref[...], x, preferred_element_type=jnp.float32) + b1_ref[...]
    h = jnp.maximum(h, _SLOPE * h)
    y = jnp.dot(w2_ref[...], h.astype(jnp.bfloat16),
                preferred_element_type=jnp.float32)                 # (c2, T) f32
    y = y * scale_ref[...] + shift_ref[...]                         # folded BN, f32
    y = jnp.maximum(y, _SLOPE * y)                                  # LeakyReLU(0.2)
    # Final 1x1 conv has a single output channel: per-pixel dot with w3 as a
    # cross-sublane (XLU) reduction -> lane-dense (1, T) output.
    o = jnp.sum(y * w3_ref[...], axis=0, keepdims=True) + b3_ref[...]
    o_ref[...] = o[None]                                            # (1, 1, T)


def pixel_discriminator(x_nchw, params, *, hw_tile=2048, eps=_EPS):
    """x_nchw: (N, Cin, H, W) -> (N, 1, H, W), matching PixelDiscriminator.forward."""
    w1, b1, w2, b2, gamma, beta, w3, b3 = params
    del b2  # cancelled exactly by the training-mode BatchNorm that follows conv2
    N, Cin, H, W = x_nchw.shape
    ndf = w1.shape[1]
    c2 = w2.shape[1]
    HW = H * W
    M = N * HW

    # Keep NCHW; just flatten spatial dims (free reshape). Channels land on
    # sublanes, pixels on the 128-lane axis inside the kernels.
    x = x_nchw.astype(jnp.float32).reshape(N, Cin, HW)

    hw_tile = _round_up(min(max(hw_tile, 128), _round_up(HW, 128)), 128)
    hwp = _round_up(HW, hw_tile)
    if hwp != HW:
        x = jnp.pad(x, ((0, 0), (0, 0), (0, hwp - HW)))
    grid = (N, hwp // hw_tile)
    gsteps = grid[0] * grid[1]

    # Weights in (out, in) "transposed" layout; bf16 for the MXU; rest f32.
    w1t = jnp.transpose(w1).astype(jnp.bfloat16)     # (ndf, Cin)
    w2t = jnp.transpose(w2).astype(jnp.bfloat16)     # (c2, ndf)
    b1c = b1.reshape(ndf, 1).astype(jnp.float32)

    cparams = pltpu.CompilerParams(
        dimension_semantics=("parallel", "parallel"),
        vmem_limit_bytes=32 * 1024 * 1024)

    # ---- Pass 1: conv1 + LeakyReLU + conv2, emit per-tile BN statistics only ----
    k1 = functools.partial(_stats_kernel, hw_valid=HW, hw_tile=hw_tile)
    flops_core = 2 * (Cin * ndf + ndf * c2) + 4 * (ndf + c2)
    flops1 = N * hwp * (flops_core + 3 * c2)
    bytes1 = (4 * N * hwp * Cin + 2 * (Cin * ndf + ndf * c2)
              + 4 * (ndf + gsteps * 2 * c2))
    s1, s2 = pl.pallas_call(
        k1,
        out_shape=(jax.ShapeDtypeStruct((N, grid[1], c2, 1), jnp.float32),
                   jax.ShapeDtypeStruct((N, grid[1], c2, 1), jnp.float32)),
        grid_spec=pltpu.PrefetchScalarGridSpec(
            num_scalar_prefetch=0,
            grid=grid,
            in_specs=[pl.BlockSpec((1, Cin, hw_tile), lambda n, j: (n, 0, j)),
                      pl.BlockSpec((ndf, Cin), lambda n, j: (0, 0)),
                      pl.BlockSpec((ndf, 1), lambda n, j: (0, 0)),
                      pl.BlockSpec((c2, ndf), lambda n, j: (0, 0))],
            out_specs=(pl.BlockSpec((1, 1, c2, 1), lambda n, j: (n, j, 0, 0)),
                       pl.BlockSpec((1, 1, c2, 1), lambda n, j: (n, j, 0, 0)))),
        compiler_params=cparams,
        cost_estimate=pl.CostEstimate(flops=flops1, transcendentals=0,
                                      bytes_accessed=bytes1),
    )(x, w1t, b1c, w2t)

    # ---- Fold BatchNorm (biased batch variance) into per-channel scale/shift ----
    # NOTE: E[x^2]-E[x]^2 in f32; per-tile partial sums keep accumulation error small.
    ssum = jnp.sum(s1[..., 0], axis=(0, 1))
    ssq = jnp.sum(s2[..., 0], axis=(0, 1))
    mean = ssum / M
    var = jnp.maximum(ssq / M - mean * mean, 0.0)
    inv_std = jax.lax.rsqrt(var + eps)
    scale = (gamma * inv_std).reshape(c2, 1).astype(jnp.float32)
    shift = (beta - mean * gamma * inv_std).reshape(c2, 1).astype(jnp.float32)
    w3c = w3.reshape(c2, 1).astype(jnp.float32)
    b3r = b3.reshape(1, 1).astype(jnp.float32)

    # ---- Pass 2: recompute conv1/conv2 + folded BN + LeakyReLU + final 1x1 conv ----
    flops2 = N * hwp * (flops_core + 5 * c2)
    bytes2 = (4 * (N * hwp * Cin + N * hwp) + 2 * (Cin * ndf + ndf * c2)
              + 4 * (ndf + 3 * c2 + 1))
    out = pl.pallas_call(
        _fused_kernel,
        out_shape=jax.ShapeDtypeStruct((N, 1, hwp), jnp.float32),
        grid_spec=pltpu.PrefetchScalarGridSpec(
            num_scalar_prefetch=0,
            grid=grid,
            in_specs=[pl.BlockSpec((1, Cin, hw_tile), lambda n, j: (n, 0, j)),
                      pl.BlockSpec((ndf, Cin), lambda n, j: (0, 0)),
                      pl.BlockSpec((ndf, 1), lambda n, j: (0, 0)),
                      pl.BlockSpec((c2, ndf), lambda n, j: (0, 0)),
                      pl.BlockSpec((c2, 1), lambda n, j: (0, 0)),
                      pl.BlockSpec((c2, 1), lambda n, j: (0, 0)),
                      pl.BlockSpec((c2, 1), lambda n, j: (0, 0)),
                      pl.BlockSpec((1, 1), lambda n, j: (0, 0))],
            out_specs=pl.BlockSpec((1, 1, hw_tile), lambda n, j: (n, 0, j))),
        compiler_params=cparams,
        cost_estimate=pl.CostEstimate(flops=flops2, transcendentals=0,
                                      bytes_accessed=bytes2),
    )(x, w1t, b1c, w2t, scale, shift, w3c, b3r)

    return out[:, :, :HW].reshape(N, 1, H, W)            # NCHW: (N, 1, H, W)


def _ref_forward(x_nchw, params, *, mxu_dtype=jnp.float32, eps=_EPS):
    """Pure-JAX reference of PixelDiscriminator.forward (training-mode BatchNorm)."""
    w1, b1, w2, b2, gamma, beta, w3, b3 = params
    N, Cin, H, W = x_nchw.shape
    x = jnp.transpose(x_nchw, (0, 2, 3, 1)).astype(jnp.float32).reshape(-1, Cin)

    def lrelu(z):
        return jnp.where(z >= 0, z, _SLOPE * z)

    def mm(a, w):
        return jnp.dot(a.astype(mxu_dtype), w.astype(mxu_dtype),
                       preferred_element_type=jnp.float32,
                       precision=jax.lax.Precision.HIGHEST)

    h = lrelu(mm(x, w1) + b1[None, :])
    y = mm(h, w2) + b2[None, :]
    m = jnp.mean(y, axis=0, keepdims=True)
    v = jnp.mean(jnp.square(y - m), axis=0, keepdims=True)
    y = (y - m) * jax.lax.rsqrt(v + eps) * gamma[None, :] + beta[None, :]
    y = lrelu(y)
    o = jnp.dot(y, w3, preferred_element_type=jnp.float32,
                precision=jax.lax.Precision.HIGHEST) + b3[None, :]
    return jnp.transpose(o.reshape(N, H, W, 1), (0, 3, 1, 2))


def _init_params(key, input_nc, ndf):
    """Conv2d 1x1 weights stored in (Cin, Cout) matmul layout."""
    ks = jax.random.split(key, 8)
    c2 = 2 * ndf
    w1 = 0.1 * jax.random.normal(ks[0], (input_nc, ndf), jnp.float32)
    b1 = 0.05 * jax.random.normal(ks[1], (ndf,), jnp.float32)
    w2 = 0.1 * jax.random.normal(ks[2], (ndf, c2), jnp.float32)
    b2 = 0.05 * jax.random.normal(ks[3], (c2,), jnp.float32)      # dead under BN(batch stats)
    gamma = 1.0 + 0.1 * jax.random.normal(ks[4], (c2,), jnp.float32)
    beta = 0.05 * jax.random.normal(ks[5], (c2,), jnp.float32)
    w3 = 0.1 * jax.random.normal(ks[6], (c2, 1), jnp.float32)
    b3 = 0.05 * jax.random.normal(ks[7], (1,), jnp.float32)
    return (w1, b1, w2, b2, gamma, beta, w3, b3)


if __name__ == "__main__":
    key = jax.random.PRNGKey(0)
    kx, kp = jax.random.split(key)

    N, Cin, H, W = 2, 4, 16, 16     # small input_nc; NCHW like PyTorch
    ndf = 64                        # module default -> 2*ndf = 128 = one full lane width
    x = jax.random.normal(kx, (N, Cin, H, W), jnp.float32)
    params = _init_params(kp, Cin, ndf)

    out = jax.block_until_ready(pixel_discriminator(x, params))
    assert out.shape == (N, 1, H, W), out.shape

    # Strict check vs a reference using the SAME precision policy (bf16 MXU operands,
    # f32 accumulation) -- isolates kernel bugs from the dtype policy.
    ref_bf16 = jax.block_until_ready(_ref_forward(x, params, mxu_dtype=jnp.bfloat16))
    assert jnp.allclose(out, ref_bf16, atol=2e-3, rtol=2e-3), \
        f"max abs diff vs bf16-policy ref: {jnp.max(jnp.abs(out - ref_bf16))}"

    # Loose check vs the faithful full-f32 reference (PyTorch-equivalent math);
    # the only intended deviation is bf16 rounding of the MXU matmul operands.
    ref_f32 = jax.block_until_ready(_ref_forward(x, params, mxu_dtype=jnp.float32))
    assert jnp.allclose(out, ref_f32, atol=1e-1, rtol=1e-1), \
        f"max abs diff vs f32 ref: {jnp.max(jnp.abs(out - ref_f32))}"

    print("KERNEL_OK")
</pallas_src>

<mosaic_0001>
module attributes {stable_mosaic.version = 11 : i64} {
  func.func @_stats_kernel(%arg0: i32, %arg1: i32, %arg2: memref<1x4x256xf32, #tpu.memory_space<vmem>>, %arg3: memref<64x4xbf16, #tpu.memory_space<vmem>>, %arg4: memref<64x1xf32, #tpu.memory_space<vmem>>, %arg5: memref<128x64xbf16, #tpu.memory_space<vmem>>, %arg6: memref<1x1x128x1xf32, #tpu.memory_space<vmem>>, %arg7: memref<1x1x128x1xf32, #tpu.memory_space<vmem>>) attributes {dimension_semantics = [#tpu.dimension_semantics<parallel>, #tpu.dimension_semantics<parallel>], iteration_bounds = array<i64: 2, 1>, scalar_prefetch = 0 : i64, scratch_operands = 0 : i64, tpu.core_type = #tpu.core_type<tc>, window_params = [{transform_indices = @transform_0, window_bounds = array<i64: 1, 4, 256>}, {pipeline_mode = #tpu.pipeline_mode<synchronous>, transform_indices = @transform_1, window_bounds = array<i64: 64, 4>}, {pipeline_mode = #tpu.pipeline_mode<synchronous>, transform_indices = @transform_2, window_bounds = array<i64: 64, 1>}, {pipeline_mode = #tpu.pipeline_mode<synchronous>, transform_indices = @transform_3, window_bounds = array<i64: 128, 64>}, {transform_indices = @transform_4, window_bounds = array<i64: 1, 1, 128, 1>}, {transform_indices = @transform_5, window_bounds = array<i64: 1, 1, 128, 1>}]} {
    %c0 = arith.constant 0 : index
    %c0_0 = arith.constant 0 : index
    %c0_1 = arith.constant 0 : index
    %0 = vector.load %arg2[%c0, %c0_0, %c0_1] : memref<1x4x256xf32, #tpu.memory_space<vmem>>, vector<1x4x256xf32>
    %1 = vector.shape_cast %0 : vector<1x4x256xf32> to vector<4x256xf32>
    %2 = arith.truncf %1 : vector<4x256xf32> to vector<4x256xbf16>
    %c0_2 = arith.constant 0 : index
    %c0_3 = arith.constant 0 : index
    %3 = vector.load %arg3[%c0_2, %c0_3] : memref<64x4xbf16, #tpu.memory_space<vmem>>, vector<64x4xbf16>
    %cst = arith.constant dense<0.000000e+00> : vector<64x256xf32>
    %4 = tpu.matmul %3, %2, %cst {dimension_numbers = #tpu.dot_dimension_numbers<[1], [0], [0], [1], [0, 0, 1, 1], [], []>} : vector<64x4xbf16>, vector<4x256xbf16>, vector<64x256xf32> -> vector<64x256xf32>
    %c0_4 = arith.constant 0 : index
    %c0_5 = arith.constant 0 : index
    %5 = vector.load %arg4[%c0_4, %c0_5] : memref<64x1xf32, #tpu.memory_space<vmem>>, vector<64x1xf32>
    %6 = vector.broadcast %5 : vector<64x1xf32> to vector<64x256xf32>
    %7 = arith.addf %4, %6 : vector<64x256xf32>
    %cst_6 = arith.constant 2.000000e-01 : f32
    %8 = vector.broadcast %cst_6 : f32 to vector<64x256xf32>
    %9 = arith.mulf %8, %7 : vector<64x256xf32>
    %10 = arith.maximumf %7, %9 : vector<64x256xf32>
    %c0_7 = arith.constant 0 : index
    %c0_8 = arith.constant 0 : index
    %11 = vector.load %arg5[%c0_7, %c0_8] : memref<128x64xbf16, #tpu.memory_space<vmem>>, vector<128x64xbf16>
    %12 = arith.truncf %10 : vector<64x256xf32> to vector<64x256xbf16>
    %cst_9 = arith.constant dense<0.000000e+00> : vector<128x256xf32>
    %13 = tpu.matmul %11, %12, %cst_9 {dimension_numbers = #tpu.dot_dimension_numbers<[1], [0], [0], [1], [0, 0, 1, 1], [], []>} : vector<128x64xbf16>, vector<64x256xbf16>, vector<128x256xf32> -> vector<128x256xf32>
    %cst_10 = arith.constant dense<0.000000e+00> : vector<128xf32>
    %14 = vector.multi_reduction <add>, %13, %cst_10 [1] : vector<128x256xf32> to vector<128xf32>
    %15 = vector.shape_cast %14 : vector<128xf32> to vector<128x1xf32>
    %16 = vector.shape_cast %15 : vector<128x1xf32> to vector<1x1x128x1xf32>
    %c0_11 = arith.constant 0 : index
    %c0_12 = arith.constant 0 : index
    %c0_13 = arith.constant 0 : index
    %c0_14 = arith.constant 0 : index
    %17 = vector.load %arg6[%c0_11, %c0_12, %c0_13, %c0_14] : memref<1x1x128x1xf32, #tpu.memory_space<vmem>>, vector<1x1x128x1xf32>
    tpu.vector_store %arg6[%c0_11, %c0_12, %c0_13, %c0_14], %16 {strides = array<i32>} : memref<1x1x128x1xf32, #tpu.memory_space<vmem>>, vector<1x1x128x1xf32>,
    %18 = arith.mulf %13, %13 : vector<128x256xf32>
    %cst_15 = arith.constant dense<0.000000e+00> : vector<128xf32>
    %19 = vector.multi_reduction <add>, %18, %cst_15 [1] : vector<128x256xf32> to vector<128xf32>
    %20 = vector.shape_cast %19 : vector<128xf32> to vector<128x1xf32>
    %21 = vector.shape_cast %20 : vector<128x1xf32> to vector<1x1x128x1xf32>
    %c0_16 = arith.constant 0 : index
    %c0_17 = arith.constant 0 : index
    %c0_18 = arith.constant 0 : index
    %c0_19 = arith.constant 0 : index
    %22 = vector.load %arg7[%c0_16, %c0_17, %c0_18, %c0_19] : memref<1x1x128x1xf32, #tpu.memory_space<vmem>>, vector<1x1x128x1xf32>
    tpu.vector_store %arg7[%c0_16, %c0_17, %c0_18, %c0_19], %21 {strides = array<i32>} : memref<1x1x128x1xf32, #tpu.memory_space<vmem>>, vector<1x1x128x1xf32>,
    return
  }
  func.func @transform_0(%arg0: i32, %arg1: i32) -> (i32, i32, i32) {
    %c0_i32 = arith.constant 0 : i32
    %c0_i32_0 = arith.constant 0 : i32
    return %arg0, %c0_i32, %arg1 : i32, i32, i32
  }
  func.func @transform_1(%arg0: i32, %arg1: i32) -> (i32, i32) {
    %c0_i32 = arith.constant 0 : i32
    %c0_i32_0 = arith.constant 0 : i32
    %c0_i32_1 = arith.constant 0 : i32
    return %c0_i32, %c0_i32_0 : i32, i32
  }
  func.func @transform_2(%arg0: i32, %arg1: i32) -> (i32, i32) {
    %c0_i32 = arith.constant 0 : i32
    %c0_i32_0 = arith.constant 0 : i32
    %c0_i32_1 = arith.constant 0 : i32
    return %c0_i32, %c0_i32_0 : i32, i32
  }
  func.func @transform_3(%arg0: i32, %arg1: i32) -> (i32, i32) {
    %c0_i32 = arith.constant 0 : i32
    %c0_i32_0 = arith.constant 0 : i32
    %c0_i32_1 = arith.constant 0 : i32
    return %c0_i32, %c0_i32_0 : i32, i32
  }
  func.func @transform_4(%arg0: i32, %arg1: i32) -> (i32, i32, i32, i32) {
    %c0_i32 = arith.constant 0 : i32
    %c0_i32_0 = arith.constant 0 : i32
    %c0_i32_1 = arith.constant 0 : i32
    return %arg0, %arg1, %c0_i32, %c0_i32_0 : i32, i32, i32, i32
  }
  func.func @transform_5(%arg0: i32, %arg1: i32) -> (i32, i32, i32, i32) {
    %c0_i32 = arith.constant 0 : i32
    %c0_i32_0 = arith.constant 0 : i32
    %c0_i32_1 = arith.constant 0 : i32
    return %arg0, %arg1, %c0_i32, %c0_i32_0 : i32, i32, i32, i32
  }
}

</mosaic_0001>

<bundles_post_ra>
// kernel: tpu_custom_call.1
= control target key start
LH: loop header
LB: loop body
LE: loop exit
PB: predicated region body
PF: predicated region fallthrough
CT: control target
= control target key end

     0   :  { %s1163_s18 = smov 0   ;;  %s1165_s19 = smov 0   ;;  %s1355_s0 = inlined_call_operand.vmem [shape: f32[2,4,256], index: 0, kind: input, shape index: {}]   ;;  %s1356_s1 = inlined_call_operand.vmem [shape: bf16[64,4], index: 1, kind: input, shape index: {}]   ;;  %s1357_s2 = inlined_call_operand.vmem [shape: f32[64,1], index: 2, kind: input, shape index: {}]   ;;  %s1358_s3 = inlined_call_operand.vmem [shape: bf16[128,64], index: 3, kind: input, shape index: {}]   ;;  %s1359_s4 = inlined_call_operand.vmem [shape: f32[2,1,128,1], index: 4, kind: output, shape index: {0}]   ;;  %s1360_s5 = inlined_call_operand.vmem [shape: f32[2,1,128,1], index: 5, kind: output, shape index: {1}]  }
   0x1   :  { %s1167_s20 = smov 0  }
   0x2 LB: > { %s28_s21 = sadd.s32 1, %s1126_s19  ;;  %p976_p0 = scmp.ge.s32.totalorder %s1130_s20, 1  ;;  %s1130_s20 = sphi %s1167_s20, %s16_s20   ;;  %s1126_s19 = sphi %s1165_s19, %s1362_s19   ;;  %s1122_s18 = sphi %s1163_s18, %s1361_s18  }
   0x3   : > { %p30_p1 = scmp.ge.s32.totalorder %s28_s21, 2  ;;  %p213_p2 = scmp.lt.s32.totalorder %s1130_s20, 3 }
   0x5   : > { %s1364_s21 = smov (%p30_p1, %s28_s21), 0  ;;  %p214_p3 = pnand %p976_p0, %p213_p2 }
   0x6   : > { %p259_p4 = scmp.lt.s32.totalorder (!%p214_p3), %s1122_s18, 1 }
   0x7   : > { %217 = sbr.rel (%p214_p3) target bundleno = 584 (0x248), region = 36 }
   0xc   : > { %v310_v0 = vld [vmem:[%s1357_s2 + $0x30] sm:$0xff]  ;;  %v1132_v1 = vmov 0   ;;  %v308_v2 = vld [vmem:[%s1357_s2 + $0x20] sm:$0xff]  ;;  %s1366_s18 = smov (!%p259_p4, %s1122_s18), 1  ;;  %v311_v4 = vld [vmem:[%s1357_s2 + $0x38] sm:$0xff]  ;;  %vm385_vm0 = vcmask 1041408  }
   0xd   : > { %1105 = vset.pattern.permute.xlu0 %v1132_v1  ;;  %1106 = vset.pattern.permute.xlu1 %v1132_v1  ;;  %s1057_s26 = sshll.u32 %s1366_s18, 3  ;;  %v309_v5 = vld [vmem:[%s1357_s2 + $0x28] sm:$0xff]  ;;  %v304_v10 = vld [vmem:[%s1357_s2] sm:$0xff]  ;;  %vm372_vm1 = vcmask 31744   ;;  %v306_v16 = vld [vmem:[%s1357_s2 + $0x10] sm:$0xff]  ;;  %vm546_vm2 = vcmask 523264  }
   0xe   : > { %344 = vperm.xlu0 %1105, %v310_v0   ;;  %334 = vperm.xlu1 %1106, %v308_v2   ;;  %s266_s29 = scalar_lea.vmem %s1355_s0, %s1057_s26  ;;  %v305_v11 = vld [vmem:[%s1357_s2 + $0x8] sm:$0xff]  ;;  %v1060_v14 = vld [vmem:[%s1356_s1] sm:$0xff]  ;;  %v307_v17 = vld [vmem:[%s1357_s2 + $0x18] sm:$0xff]  ;;  %s1058_s24 = sshll.u32 %s1366_s18, 7  ;;  %vm717_vm3 = vcmask 7168  }
   0xf   : > { %1107 = vset.pattern.permute.xlu2 %v1132_v1  ;;  %v287_v3 = vld [vmem:[%s266_s29] sm:$0xff]  ;;  %v1061_v15 = vld [vmem:[%s1356_s1 + $0x8] sm:$0xff]  ;;  %v1062_v18 = vld [vmem:[%s1356_s1 + $0x10] sm:$0xff]  ;;  %s1275_s27 = scalar_lea.vmem %s1359_s4, %s1058_s24  ;;  %s1282_s30 = scalar_lea.vmem %s1360_s5, %s1058_s24 }
  0x10   : > { %289 = vst [vmem:[#allocation1] ss:$2 sm:$0xff] %v287_v3  ;;  %324 = vperm.xlu2 %1107, %v306_v16   ;;  %v1063_v19 = vld [vmem:[%s1356_s1 + $0x18] sm:$0xff] }
  0x16   : > { %349 = vperm.xlu0 %1105, %v311_v4   ;;  %339 = vperm.xlu1 %1106, %v309_v5  }
  0x17   : > { %v290_v6 = vld.sshfl [vmem:[#allocation1] sm:$0xff pattern:$0x75316420]  ;;  %v291_v7 = vld.sshfl [vmem:[#allocation1 + $0x8] sm:$0xff pattern:$0x75316420] }
  0x18   : > { %v294_v8 = vpack.c.bf16 %v290_v6, %v290_v6  ;;  %v295_v9 = vpack.c.bf16 %v291_v7, %v291_v7  ;;  %329 = vperm.xlu2 %1107, %v307_v17  }
  0x1a   : > { %v387_v12 = vsel %vm385_vm0, %v294_v8, 0  ;;  %v390_v13 = vsel %vm385_vm0, %v295_v9, 0 }
  0x1b   : > { %399 = vmatpush.bf16.msra.mxu0 %v387_v12  ;;  %428 = vmatpush.bf16.msra.mxu1 %v390_v13 }
  0x1e   : > { %314 = vperm.xlu0 %1105, %v304_v10   ;;  %319 = vperm.xlu1 %1106, %v305_v11  }
  0x1f   : > { %999 = vmatmul.msk.bf16.vlgmr.msra.gmra.mxu0 %vm372_vm1, %v1060_v14  ;;  %1003 = vmatmul.msk.bf16.vlgmr.msra.gmra.mxu1 %vm372_vm1, %v1060_v14 }
  0x2f   : > { %1000 = vmatmul.msk.bf16.gmra.mxu0 %vm372_vm1, %v1061_v15  ;;  %1004 = vmatmul.msk.bf16.gmra.mxu1 %vm372_vm1, %v1061_v15 }
  0x3f   : > { %1001 = vmatmul.msk.bf16.gmra.mxu0 %vm372_vm1, %v1062_v18  ;;  %1005 = vmatmul.msk.bf16.gmra.mxu1 %vm372_vm1, %v1062_v18 }
  0x4f   : > { %1002 = vmatmul.msk.bf16.gmra.mxu0 %vm372_vm1, %v1063_v19  ;;  %1006 = vmatmul.msk.bf16.gmra.mxu1 %vm372_vm1, %v1063_v19 }
  0x6a   : > { %v325_v34 = vpop.permute.xlu2 %324 }
  0x72   : > { %v330_v41 = vpop.permute.xlu2 %329 }
  0x80   : > { %v335_v30 = vpop.permute.xlu1 %334  ;;  %v345_v33 = vpop.permute.xlu0 %344 }
  0x88   : > { %v340_v37 = vpop.permute.xlu1 %339  ;;  %v350_v38 = vpop.permute.xlu0 %349 }
  0x90   : > { %v320_v52 = vpop.permute.xlu1 %319  ;;  %v315_v1 = vpop.permute.xlu0 %314 }
  0x9c   : > { %v401_v20 = vpop.f32.mrf.mxu0  ;;  %v430_v21 = vpop.f32.mrf.mxu1 }
  0x9d   : > { %v402_v12 = vadd.f32 %v401_v20, %v315_v1  ;;  %v431_v15 = vadd.f32 %v430_v21, %v315_v1 }
  0x9f   : > { %v451_v20 = vmul.f32 0.2, %v431_v15 }
  0xa4   : > { %v403_v22 = vpop.f32.mrf.mxu0  ;;  %v432_v23 = vpop.f32.mrf.mxu1 }
  0xa5   : > { %v404_v2 = vadd.f32 %v403_v22, %v320_v52  ;;  %v433_v9 = vadd.f32 %v432_v23, %v320_v52 }
  0xa7   : > { %v452_v18 = vmul.f32 0.2, %v404_v2 }
  0xac   : > { %v406_v24 = vpop.f32.mrf.mxu0  ;;  %v435_v25 = vpop.f32.mrf.mxu1 }
  0xad   : > { %v407_v57 = vadd.f32 %v406_v24, %v325_v34  ;;  %v436_v3 = vadd.f32 %v435_v25, %v325_v34  ;;  %v453_v24 = vmul.f32 0.2, %v433_v9 }
  0xaf   : > { %v454_v13 = vmul.f32 0.2, %v407_v57  ;;  %v455_v16 = vmul.f32 0.2, %v436_v3 }
  0xb1   : > { %v470_v23 = vmax.f32 %v407_v57, %v454_v13 }
  0xb4   : > { %v408_v26 = vpop.f32.mrf.mxu0  ;;  %v437_v27 = vpop.f32.mrf.mxu1 }
  0xb5   : > { %v409_v53 = vadd.f32 %v408_v26, %v330_v41  ;;  %v438_v58 = vadd.f32 %v437_v27, %v330_v41  ;;  %v450_v27 = vmul.f32 0.2, %v402_v12  ;;  %v1069_v41 = vld [vmem:[%s1358_s3 + $0x28] sm:$0xff] }
  0xb7   : > { %v456_v5 = vmul.f32 0.2, %v409_v53  ;;  %v457_v10 = vmul.f32 0.2, %v438_v58 }
  0xb9   : > { %v472_v19 = vmax.f32 %v409_v53, %v456_v5  ;;  %v473_v25 = vmax.f32 %v438_v58, %v457_v10 }
  0xbb   : > { %v500_v21 = vpack.c.bf16 %v472_v19, %v470_v23 }
  0xbc   : > { %v411_v28 = vpop.f32.mrf.mxu0  ;;  %v440_v29 = vpop.f32.mrf.mxu1 }
  0xbd   : > { %v412_v43 = vadd.f32 %v411_v28, %v335_v30  ;;  %v441_v51 = vadd.f32 %v440_v29, %v335_v30  ;;  %v471_v28 = vmax.f32 %v436_v3, %v455_v16  ;;  %v468_v29 = vmax.f32 %v404_v2, %v452_v18 }
  0xbe   : > { %v469_v30 = vmax.f32 %v433_v9, %v453_v24 }
  0xbf   : > { %v458_v59 = vmul.f32 0.2, %v412_v43  ;;  %v459_v4 = vmul.f32 0.2, %v441_v51 }
  0xc1   : > { %v474_v14 = vmax.f32 %v412_v43, %v458_v59  ;;  %v475_v17 = vmax.f32 %v441_v51, %v459_v4  ;;  %v1071_v43 = vld [vmem:[%s1358_s3 + $0x38] sm:$0xff] }
  0xc4   : > { %v413_v31 = vpop.f32.mrf.mxu0  ;;  %v442_v32 = vpop.f32.mrf.mxu1 }
  0xc5   : > { %v414_v42 = vadd.f32 %v413_v31, %v340_v37  ;;  %v443_v44 = vadd.f32 %v442_v32, %v340_v37  ;;  %v501_v31 = vpack.c.bf16 %v473_v25, %v471_v28  ;;  %v466_v32 = vmax.f32 %v402_v12, %v450_v27  ;;  %v1066_v37 = vld [vmem:[%s1358_s3 + $0x10] sm:$0xff] }
  0xc7   : > { %v460_v54 = vmul.f32 0.2, %v414_v42  ;;  %v461_v60 = vmul.f32 0.2, %v443_v44  ;;  %v498_v34 = vpack.c.bf16 %v468_v29, %v466_v32 }
  0xc9   : > { %v476_v6 = vmax.f32 %v414_v42, %v460_v54  ;;  %v477_v11 = vmax.f32 %v443_v44, %v461_v60  ;;  %v1070_v42 = vld [vmem:[%s1358_s3 + $0x30] sm:$0xff] }
  0xcb   : > { %v502_v22 = vpack.c.bf16 %v476_v6, %v474_v14  ;;  %v503_v26 = vpack.c.bf16 %v477_v11, %v475_v17 }
  0xcc   : > { %v416_v35 = vpop.f32.mrf.mxu0  ;;  %v445_v36 = vpop.f32.mrf.mxu1 }
  0xcd   : > { %v417_v39 = vadd.f32 %v416_v35, %v345_v33  ;;  %v446_v40 = vadd.f32 %v445_v36, %v345_v33  ;;  %v467_v33 = vmax.f32 %v431_v15, %v451_v20  ;;  %v1064_v36 = vld [vmem:[%s1358_s3] sm:$0xff] }
  0xcf   : > { %v462_v47 = vmul.f32 0.2, %v417_v39  ;;  %v463_v48 = vmul.f32 0.2, %v446_v40  ;;  %v499_v35 = vpack.c.bf16 %v469_v30, %v467_v33 }
  0xd1   : > { %v478_v61 = vmax.f32 %v417_v39, %v462_v47  ;;  %v479_v62 = vmax.f32 %v446_v40, %v463_v48  ;;  %v1067_v39 = vld [vmem:[%s1358_s3 + $0x18] sm:$0xff]  ;;  %v1068_v40 = vld [vmem:[%s1358_s3 + $0x20] sm:$0xff] }
  0xd4   : > { %v418_v45 = vpop.f32.mrf.mxu0  ;;  %v447_v46 = vpop.f32.mrf.mxu1 }
  0xd5   : > { %v419_v49 = vadd.f32 %v418_v45, %v350_v38  ;;  %v448_v50 = vadd.f32 %v447_v46, %v350_v38  ;;  %v1065_v38 = vld [vmem:[%s1358_s3 + $0x8] sm:$0xff] }
  0xd7   : > { %v464_v55 = vmul.f32 0.2, %v419_v49  ;;  %v465_v56 = vmul.f32 0.2, %v448_v50 }
  0xd9   : > { %v480_v63 = vmax.f32 %v419_v49, %v464_v55  ;;  %v481_v0 = vmax.f32 %v448_v50, %v465_v56 }
  0xdb   : > { %v504_v7 = vpack.c.bf16 %v480_v63, %v478_v61  ;;  %v505_v8 = vpack.c.bf16 %v481_v0, %v479_v62 }
  0xdd   : > { %575 = vmatpush.bf16.msrb.mxu0 %v504_v7  ;;  %1072 = vmatpush.bf16.msra.mxu2 %v504_v7 }
  0xde   : > { %624 = vmatpush.bf16.msrb.mxu1 %v505_v8  ;;  %1076 = vmatpush.bf16.msra.mxu3 %v505_v8 }
  0xe1   : > { %576 = vmatpush.bf16.msrb.mxu0 %v502_v22  ;;  %1073 = vmatpush.bf16.msra.mxu2 %v502_v22 }
  0xe2   : > { %625 = vmatpush.bf16.msrb.mxu1 %v503_v26  ;;  %1077 = vmatpush.bf16.msra.mxu3 %v503_v26 }
  0xe5   : > { %577 = vmatpush.bf16.msrb.mxu0 %v500_v21  ;;  %1074 = vmatpush.bf16.msra.mxu2 %v500_v21 }
  0xe6   : > { %626 = vmatpush.bf16.msrb.mxu1 %v501_v31  ;;  %1078 = vmatpush.bf16.msra.mxu3 %v501_v31 }
  0xe9   : > { %578 = vmatpush.bf16.msrb.mxu0 %v498_v34  ;;  %1075 = vmatpush.bf16.msra.mxu2 %v498_v34 }
  0xea   : > { %627 = vmatpush.bf16.msrb.mxu1 %v499_v35  ;;  %1079 = vmatpush.bf16.msra.mxu3 %v499_v35 }
  0xec   : > { %1039 = vmatmul.msk.bf16.vlgmr.msrb.gmra.mxu0 %vm546_vm2, %v1064_v36  ;;  %1041 = vmatmul.msk.bf16.vlgmr.msra.gmra.mxu2 %vm546_vm2, %v1066_v37 }
  0xed   : > { %1047 = vmatmul.msk.bf16.vlgmr.msrb.gmra.mxu1 %vm546_vm2, %v1064_v36  ;;  %1049 = vmatmul.msk.bf16.vlgmr.msra.gmra.mxu3 %vm546_vm2, %v1066_v37 }
  0xfc   : > { %1040 = vmatmul.msk.bf16.gmra.mxu0 %vm546_vm2, %v1065_v38  ;;  %1042 = vmatmul.msk.bf16.gmra.mxu2 %vm546_vm2, %v1067_v39 }
  0xfd   : > { %1048 = vmatmul.msk.bf16.gmra.mxu1 %vm546_vm2, %v1065_v38  ;;  %1050 = vmatmul.msk.bf16.gmra.mxu3 %vm546_vm2, %v1067_v39 }
 0x10c   : > { %1043 = vmatmul.msk.bf16.gmra.mxu2 %vm546_vm2, %v1068_v40 }
 0x10d   : > { %1051 = vmatmul.msk.bf16.gmra.mxu3 %vm546_vm2, %v1068_v40 }
 0x11c   : > { %1044 = vmatmul.msk.bf16.gmra.mxu2 %vm546_vm2, %v1069_v41 }
 0x11d   : > { %1052 = vmatmul.msk.bf16.gmra.mxu3 %vm546_vm2, %v1069_v41 }
 0x12c   : > { %1045 = vmatmul.msk.bf16.gmra.mxu2 %vm546_vm2, %v1070_v42 }
 0x12d   : > { %1053 = vmatmul.msk.bf16.gmra.mxu3 %vm546_vm2, %v1070_v42 }
 0x13c   : > { %1046 = vmatmul.msk.bf16.gmra.mxu2 %vm546_vm2, %v1071_v43 }
 0x13d   : > { %1054 = vmatmul.msk.bf16.gmra.mxu3 %vm546_vm2, %v1071_v43 }
 0x169   : > { %v580_v44 = vpop.f32.mrf.mxu0 }
 0x16a   : > { %v629_v45 = vpop.f32.mrf.mxu1  ;;  %v734_v47 = vmul.f32 %v580_v44, %v580_v44 }
 0x16b   : > { %v669_v46 = vadd.f32 %v629_v45, %v580_v44  ;;  %v735_v48 = vmul.f32 %v629_v45, %v629_v45 }
 0x16d   : > { %670 = vadd.xlane.f32.xlu2 %v669_v46  ;;  %v766_v52 = vadd.f32 %v735_v48, %v734_v47 }
 0x16f   : > { %v590_v49 = vpop.f32.mrf.mxu2 }
 0x170   : > { %v639_v50 = vpop.f32.mrf.mxu3  ;;  %v742_v55 = vmul.f32 %v590_v49, %v590_v49 }
 0x171   : > { %v582_v51 = vpop.f32.mrf.mxu0  ;;  %v743_v56 = vmul.f32 %v639_v50, %v639_v50  ;;  %v681_v61 = vadd.f32 %v639_v50, %v590_v49 }
 0x172   : > { %v631_v53 = vpop.f32.mrf.mxu1  ;;  %v736_v0 = vmul.f32 %v582_v51, %v582_v51 }
 0x173   : > { %v672_v54 = vadd.f32 %v631_v53, %v582_v51  ;;  %v778_v62 = vadd.f32 %v743_v56, %v742_v55  ;;  %v737_v1 = vmul.f32 %v631_v53, %v631_v53 }
 0x175   : > { %767 = vadd.xlane.f32.xlu2 %v766_v52  ;;  %673 = vadd.xlane.f32.xlu0 %v672_v54  ;;  %v769_v9 = vadd.f32 %v737_v1, %v736_v0 }
 0x177   : > { %v592_v57 = vpop.f32.mrf.mxu2 }
 0x178   : > { %v641_v58 = vpop.f32.mrf.mxu3  ;;  %v744_v3 = vmul.f32 %v592_v57, %v592_v57 }
 0x179   : > { %v585_v59 = vpop.f32.mrf.mxu0  ;;  %v745_v4 = vmul.f32 %v641_v58, %v641_v58  ;;  %v684_v18 = vadd.f32 %v641_v58, %v592_v57 }
 0x17a   : > { %v634_v60 = vpop.f32.mrf.mxu1  ;;  %v738_v11 = vmul.f32 %v585_v59, %v585_v59 }
 0x17b   : > { %v675_v63 = vadd.f32 %v634_v60, %v585_v59  ;;  %v781_v10 = vadd.f32 %v745_v4, %v744_v3  ;;  %v739_v12 = vmul.f32 %v634_v60, %v634_v60 }
 0x17d   : > { %682 = vadd.xlane.f32.xlu2 %v681_v61  ;;  %779 = vadd.xlane.f32.xlu0 %v778_v62  ;;  %v772_v17 = vadd.f32 %v739_v12, %v738_v11 }
 0x17e   : > { %676 = vadd.xlane.f32.xlu1 %v675_v63 }
 0x17f   : > { %v595_v2 = vpop.f32.mrf.mxu2 }
 0x180   : > { %v644_v5 = vpop.f32.mrf.mxu3  ;;  %v746_v13 = vmul.f32 %v595_v2, %v595_v2 }
 0x181   : > { %v587_v6 = vpop.f32.mrf.mxu0  ;;  %v747_v14 = vmul.f32 %v644_v5, %v644_v5  ;;  %v687_v29 = vadd.f32 %v644_v5, %v595_v2 }
 0x182   : > { %v636_v7 = vpop.f32.mrf.mxu1  ;;  %v740_v22 = vmul.f32 %v587_v6, %v587_v6 }
 0x183   : > { %v678_v8 = vadd.f32 %v636_v7, %v587_v6  ;;  %v784_v19 = vadd.f32 %v747_v14, %v746_v13  ;;  %v741_v24 = vmul.f32 %v636_v7, %v636_v7 }
 0x185   : > { %770 = vadd.xlane.f32.xlu0 %v769_v9  ;;  %679 = vadd.xlane.f32.xlu2 %v678_v8  ;;  %v775_v20 = vadd.f32 %v741_v24, %v740_v22 }
 0x186   : > { %782 = vadd.xlane.f32.xlu1 %v781_v10 }
 0x187   : > { %v597_v15 = vpop.f32.mrf.mxu2 }
 0x188   : > { %v646_v16 = vpop.f32.mrf.mxu3  ;;  %v748_v25 = vmul.f32 %v597_v15, %v597_v15 }
 0x189   : > { %v749_v26 = vmul.f32 %v646_v16, %v646_v16  ;;  %v690_v33 = vadd.f32 %v646_v16, %v597_v15 }
 0x18b   : > { %v787_v28 = vadd.f32 %v749_v26, %v748_v25 }
 0x18d   : > { %685 = vadd.xlane.f32.xlu0 %v684_v18  ;;  %785 = vadd.xlane.f32.xlu2 %v784_v19 }
 0x18e   : > { %773 = vadd.xlane.f32.xlu1 %v772_v17 }
 0x18f   : > { %v600_v27 = vpop.f32.mrf.mxu2 }
 0x190   : > { %v649_v23 = vpop.f32.mrf.mxu3  ;;  %v750_v30 = vmul.f32 %v600_v27, %v600_v27 }
 0x191   : > { %v751_v31 = vmul.f32 %v649_v23, %v649_v23  ;;  %v693_v34 = vadd.f32 %v649_v23, %v600_v27 }
 0x193   : > { %v790_v35 = vadd.f32 %v751_v31, %v750_v30 }
 0x195   : > { %776 = vadd.xlane.f32.xlu2 %v775_v20  ;;  %788 = vadd.xlane.f32.xlu0 %v787_v28 }
 0x196   : > { %688 = vadd.xlane.f32.xlu1 %v687_v29 }
 0x197   : > { %v602_v21 = vpop.f32.mrf.mxu2 }
 0x198   : > { %v651_v32 = vpop.f32.mrf.mxu3  ;;  %v752_v36 = vmul.f32 %v602_v21, %v602_v21 }
 0x199   : > { %v753_v37 = vmul.f32 %v651_v32, %v651_v32  ;;  %v696_v44 = vadd.f32 %v651_v32, %v602_v21 }
 0x19b   : > { %v793_v42 = vadd.f32 %v753_v37, %v752_v36 }
 0x19d   : > { %691 = vadd.xlane.f32.xlu2 %v690_v33  ;;  %694 = vadd.xlane.f32.xlu0 %v693_v34 }
 0x19e   : > { %791 = vadd.xlane.f32.xlu1 %v790_v35 }
 0x19f   : > { %v605_v38 = vpop.f32.mrf.mxu2 }
 0x1a0   : > { %v754_v39 = vmul.f32 %v605_v38, %v605_v38  ;;  %v654_v40 = vpop.f32.mrf.mxu3 }
 0x1a1   : > { %v755_v41 = vmul.f32 %v654_v40, %v654_v40  ;;  %v699_v50 = vadd.f32 %v654_v40, %v605_v38 }
 0x1a3   : > { %v796_v43 = vadd.f32 %v755_v41, %v754_v39 }
 0x1a5   : > { %794 = vadd.xlane.f32.xlu2 %v793_v42  ;;  %797 = vadd.xlane.f32.xlu0 %v796_v43 }
 0x1a6   : > { %697 = vadd.xlane.f32.xlu1 %v696_v44 }
 0x1a7   : > { %v607_v45 = vpop.f32.mrf.mxu2 }
 0x1a8   : > { %v756_v46 = vmul.f32 %v607_v45, %v607_v45  ;;  %v656_v47 = vpop.f32.mrf.mxu3 }
 0x1a9   : > { %v757_v48 = vmul.f32 %v656_v47, %v656_v47  ;;  %v702_v49 = vadd.f32 %v656_v47, %v607_v45 }
 0x1ab   : > { %v799_v51 = vadd.f32 %v757_v48, %v756_v46 }
 0x1ad   : > { %703 = vadd.xlane.f32.xlu0 %v702_v49  ;;  %700 = vadd.xlane.f32.xlu2 %v699_v50 }
 0x1ae   : > { %800 = vadd.xlane.f32.xlu1 %v799_v51 }
 0x1af   : > { %v610_v52 = vpop.f32.mrf.mxu2 }
 0x1b0   : > { %v758_v53 = vmul.f32 %v610_v52, %v610_v52  ;;  %v659_v54 = vpop.f32.mrf.mxu3 }
 0x1b1   : > { %v759_v55 = vmul.f32 %v659_v54, %v659_v54  ;;  %v705_v57 = vadd.f32 %v659_v54, %v610_v52 }
 0x1b3   : > { %v802_v56 = vadd.f32 %v759_v55, %v758_v53 }
 0x1b5   : > { %803 = vadd.xlane.f32.xlu2 %v802_v56 }
 0x1b6   : > { %706 = vadd.xlane.f32.xlu1 %v705_v57 }
 0x1b7   : > { %v612_v58 = vpop.f32.mrf.mxu2 }
 0x1b8   : > { %v661_v59 = vpop.f32.mrf.mxu3  ;;  %v760_v0 = vmul.f32 %v612_v58, %v612_v58 }
 0x1b9   : > { %v708_v60 = vadd.f32 %v661_v59, %v612_v58  ;;  %v761_v1 = vmul.f32 %v661_v59, %v661_v59 }
 0x1bb   : > { %v805_v5 = vadd.f32 %v761_v1, %v760_v0 }
 0x1bd   : > { %709 = vadd.xlane.f32.xlu2 %v708_v60 }
 0x1bf   : > { %v615_v61 = vpop.f32.mrf.mxu2 }
 0x1c0   : > { %v664_v62 = vpop.f32.mrf.mxu3  ;;  %v762_v9 = vmul.f32 %v615_v61, %v615_v61 }
 0x1c1   : > { %v711_v63 = vadd.f32 %v664_v62, %v615_v61  ;;  %v763_v10 = vmul.f32 %v664_v62, %v664_v62 }
 0x1c3   : > { %712 = vadd.xlane.f32.xlu0 %v711_v63  ;;  %v808_v11 = vadd.f32 %v763_v10, %v762_v9 }
 0x1c7   : > { %v617_v2 = vpop.f32.mrf.mxu2 }
 0x1c8   : > { %v764_v3 = vmul.f32 %v617_v2, %v617_v2  ;;  %v666_v4 = vpop.f32.mrf.mxu3 }
 0x1c9   : > { %v714_v6 = vadd.f32 %v666_v4, %v617_v2  ;;  %v765_v7 = vmul.f32 %v666_v4, %v666_v4 }
 0x1cb   : > { %806 = vadd.xlane.f32.xlu0 %v805_v5  ;;  %715 = vadd.xlane.f32.xlu1 %v714_v6  ;;  %v811_v8 = vadd.f32 %v765_v7, %v764_v3 }
 0x1cd   : > { %812 = vadd.xlane.f32.xlu2 %v811_v8 }
 0x1d3   : > { %809 = vadd.xlane.f32.xlu1 %v808_v11 }
 0x1e0   : > { %v671_v12 = vpop.xlane.xlu2 %670 }
 0x1e1   : > { %718 = vst.msk [vmem:[%s1275_s27] sm:$0xff] %vm717_vm3, %v671_v12 }
 0x1e8   : > { %v768_v13 = vpop.xlane.xlu2 %767  ;;  %v674_v14 = vpop.xlane.xlu0 %673 }
 0x1e9   : > { %814 = vst.msk [vmem:[%s1282_s30] sm:$0xff] %vm717_vm3, %v768_v13 }
 0x1ea   : > { %719 = vst.msk [vmem:[%s1275_s27 + $0x8] sm:$0xff] %vm717_vm3, %v674_v14 }
 0x1f0   : > { %v683_v15 = vpop.xlane.xlu2 %682  ;;  %v780_v16 = vpop.xlane.xlu0 %779 }
 0x1f1   : > { %722 = vst.msk [vmem:[%s1275_s27 + $0x20] sm:$0xff] %vm717_vm3, %v683_v15  ;;  %v677_v17 = vpop.xlane.xlu1 %676 }
 0x1f2   : > { %818 = vst.msk [vmem:[%s1282_s30 + $0x20] sm:$0xff] %vm717_vm3, %v780_v16 }
 0x1f3   : > { %720 = vst.msk [vmem:[%s1275_s27 + $0x10] sm:$0xff] %vm717_vm3, %v677_v17 }
 0x1f8   : > { %v771_v18 = vpop.xlane.xlu0 %770  ;;  %v680_v19 = vpop.xlane.xlu2 %679 }
 0x1f9   : > { %815 = vst.msk [vmem:[%s1282_s30 + $0x8] sm:$0xff] %vm717_vm3, %v771_v18  ;;  %v783_v22 = vpop.xlane.xlu1 %782 }
 0x1fa   : > { %721 = vst.msk [vmem:[%s1275_s27 + $0x18] sm:$0xff] %vm717_vm3, %v680_v19 }
 0x1fb   : > { %819 = vst.msk [vmem:[%s1282_s30 + $0x28] sm:$0xff] %vm717_vm3, %v783_v22 }
 0x200   : > { %v686_v24 = vpop.xlane.xlu0 %685  ;;  %v786_v25 = vpop.xlane.xlu2 %785 }
 0x201   : > { %723 = vst.msk [vmem:[%s1275_s27 + $0x28] sm:$0xff] %vm717_vm3, %v686_v24  ;;  %v774_v26 = vpop.xlane.xlu1 %773 }
 0x202   : > { %820 = vst.msk [vmem:[%s1282_s30 + $0x30] sm:$0xff] %vm717_vm3, %v786_v25 }
 0x203   : > { %816 = vst.msk [vmem:[%s1282_s30 + $0x10] sm:$0xff] %vm717_vm3, %v774_v26 }
 0x208   : > { %v777_v27 = vpop.xlane.xlu2 %776  ;;  %v789_v23 = vpop.xlane.xlu0 %788 }
 0x209   : > { %817 = vst.msk [vmem:[%s1282_s30 + $0x18] sm:$0xff] %vm717_vm3, %v777_v27  ;;  %v689_v20 = vpop.xlane.xlu1 %688 }
 0x20a   : > { %724 = vst.msk [vmem:[%s1275_s27 + $0x30] sm:$0xff] %vm717_vm3, %v689_v20 }
 0x20b   : > { %821 = vst.msk [vmem:[%s1282_s30 + $0x38] sm:$0xff] %vm717_vm3, %v789_v23 }
 0x210   : > { %v692_v28 = vpop.xlane.xlu2 %691  ;;  %v695_v29 = vpop.xlane.xlu0 %694 }
 0x211   : > { %725 = vst.msk [vmem:[%s1275_s27 + $0x38] sm:$0xff] %vm717_vm3, %v692_v28  ;;  %v792_v21 = vpop.xlane.xlu1 %791 }
 0x212   : > { %822 = vst.msk [vmem:[%s1282_s30 + $0x40] sm:$0xff] %vm717_vm3, %v792_v21 }
 0x213   : > { %726 = vst.msk [vmem:[%s1275_s27 + $0x40] sm:$0xff] %vm717_vm3, %v695_v29 }
 0x218   : > { %v795_v30 = vpop.xlane.xlu2 %794  ;;  %v798_v31 = vpop.xlane.xlu0 %797 }
 0x219   : > { %v698_v32 = vpop.xlane.xlu1 %697  ;;  %823 = vst.msk [vmem:[%s1282_s30 + $0x48] sm:$0xff] %vm717_vm3, %v795_v30 }
 0x21a   : > { %727 = vst.msk [vmem:[%s1275_s27 + $0x48] sm:$0xff] %vm717_vm3, %v698_v32 }
 0x21b   : > { %824 = vst.msk [vmem:[%s1282_s30 + $0x50] sm:$0xff] %vm717_vm3, %v798_v31 }
 0x220   : > { %v704_v33 = vpop.xlane.xlu0 %703  ;;  %v701_v34 = vpop.xlane.xlu2 %700 }
 0x221   : > { %729 = vst.msk [vmem:[%s1275_s27 + $0x58] sm:$0xff] %vm717_vm3, %v704_v33  ;;  %v801_v35 = vpop.xlane.xlu1 %800 }
 0x222   : > { %728 = vst.msk [vmem:[%s1275_s27 + $0x50] sm:$0xff] %vm717_vm3, %v701_v34 }
 0x223   : > { %825 = vst.msk [vmem:[%s1282_s30 + $0x58] sm:$0xff] %vm717_vm3, %v801_v35 }
 0x228   : > { %v804_v36 = vpop.xlane.xlu2 %803 }
 0x229   : > { %826 = vst.msk [vmem:[%s1282_s30 + $0x60] sm:$0xff] %vm717_vm3, %v804_v36  ;;  %v707_v37 = vpop.xlane.xlu1 %706 }
 0x22a   : > { %730 = vst.msk [vmem:[%s1275_s27 + $0x60] sm:$0xff] %vm717_vm3, %v707_v37 }
 0x230   : > { %v710_v38 = vpop.xlane.xlu2 %709 }
 0x231   : > { %731 = vst.msk [vmem:[%s1275_s27 + $0x68] sm:$0xff] %vm717_vm3, %v710_v38 }
 0x236   : > { %v713_v39 = vpop.xlane.xlu0 %712 }
 0x237   : > { %732 = vst.msk [vmem:[%s1275_s27 + $0x70] sm:$0xff] %vm717_vm3, %v713_v39 }
 0x23e   : > { %v807_v40 = vpop.xlane.xlu0 %806  ;;  %v716_v41 = vpop.xlane.xlu1 %715 }
 0x23f   : > { %827 = vst.msk [vmem:[%s1282_s30 + $0x68] sm:$0xff] %vm717_vm3, %v807_v40 }
 0x240   : > { %733 = vst.msk [vmem:[%s1275_s27 + $0x78] sm:$0xff] %vm717_vm3, %v716_v41  ;;  %v813_v42 = vpop.xlane.xlu2 %812 }
 0x241   : > { %829 = vst.msk [vmem:[%s1282_s30 + $0x78] sm:$0xff] %vm717_vm3, %v813_v42 }
 0x246   : > { %v810_v43 = vpop.xlane.xlu1 %809 }
 0x247   : > { %828 = vst.msk [vmem:[%s1282_s30 + $0x70] sm:$0xff] %vm717_vm3, %v810_v43 }
 0x248 PF: > { %s16_s20 = sadd.s32 1, %s1130_s20   ;;  %s1361_s18 = smov %s1126_s19 }
 0x249   : > { %p13_p5 = scmp.ge.s32.totalorder %s16_s20, 4   ;;  %s1362_s19 = smov %s1364_s21 }
 0x24b   :  { %15 = sbr.rel (!%p13_p5) target bundleno = 2 (0x2), region = 78 }

</bundles_post_ra>
